<compile_context>
chip_gen: v5e
topology: v5e:2x2
jax: 0.10.0
libtpu: 0.0.40
codegen_flags: <defaults>
</compile_context>

<pallas_src>
import jax
import jax.numpy as jnp
from jax import lax
from jax.experimental import pallas as pl
from jax.experimental.pallas import tpu as pltpu


def _round_up(x, m):
    return (x + m - 1) // m * m


# ----------------------------------------------------------------------------
# Pallas tiled matmul kernel (bf16 x bf16 -> f32 accumulate, fused bias/ReLU)
# ----------------------------------------------------------------------------
def _make_matmul_kernel(apply_relu, has_bias):
    def _epilogue(acc, bias, o_ref):
        r = acc if bias is None else acc + bias
        if apply_relu:
            r = jnp.maximum(r, 0.0)
        o_ref[...] = r.astype(o_ref.dtype)

    if has_bias:
        def kernel(a_ref, b_ref, bias_ref, o_ref, acc_ref):
            k = pl.program_id(2)

            @pl.when(k == 0)
            def _():
                acc_ref[...] = jnp.zeros_like(acc_ref)

            acc_ref[...] += jnp.dot(a_ref[...], b_ref[...],
                                    preferred_element_type=jnp.float32)

            @pl.when(k == pl.num_programs(2) - 1)
            def _():
                _epilogue(acc_ref[...], bias_ref[...], o_ref)
    else:
        def kernel(a_ref, b_ref, o_ref, acc_ref):
            k = pl.program_id(2)

            @pl.when(k == 0)
            def _():
                acc_ref[...] = jnp.zeros_like(acc_ref)

            acc_ref[...] += jnp.dot(a_ref[...], b_ref[...],
                                    preferred_element_type=jnp.float32)

            @pl.when(k == pl.num_programs(2) - 1)
            def _():
                _epilogue(acc_ref[...], None, o_ref)

    return kernel


_TK_CAP = 2048                      # max K tile (bf16 sublane-dim friendly)
_TM_CAP = 256                       # default max M tile
_TM_CAP_SMALL_KN = 2048             # tall tiles when K, N are both small
_B_TILE_BUDGET = 2 * 1024 * 1024    # target bytes for one weight tile (bf16)


def _padded_kn(K, N):
    """K / N padding applied ONCE to weights in prepare_params()."""
    Kp = K if K <= _TK_CAP else _round_up(K, _TK_CAP)
    Np = _round_up(N, 128)
    return Kp, Np


def _pick_tiles(M, Np, K):
    """Tile sizes for an (M, K) @ (Kp, Np) GEMM (Np already 128-aligned)."""
    # K: full-K tile when it fits (no padding to 128), else 2048-chunks.
    if K <= _TK_CAP:
        tk, Kp = K, K
    else:
        tk = _TK_CAP
        Kp = _round_up(K, tk)
    # M: balanced tiles; allow very tall tiles when the weight is tiny.
    tm_cap = _TM_CAP_SMALL_KN if (K <= 256 and Np <= 256) else _TM_CAP
    if M <= tm_cap:
        tm = _round_up(M, 16)
    else:
        nblk = pl.cdiv(M, tm_cap)
        tm = _round_up(pl.cdiv(M, nblk), 16)
    Mp = _round_up(M, tm)
    # N: per-step weight tile stays around _B_TILE_BUDGET bytes.
    tn_cap = max(128, (_B_TILE_BUDGET // (tk * 2)) // 128 * 128)
    tn = min(Np, tn_cap)
    while Np % tn != 0:             # keep tn | Np (all Np are 128-multiples)
        tn -= 128
    # Megacore: keep >= 2 blocks on a parallel axis when it is nearly free
    # (costs one extra grid step on single-TC v5e/v6e, engages both v7x TCs).
    if Mp // tm == 1 and Np // tn == 1 and Np % 256 == 0:
        tn = Np // 2
    return tm, tn, tk, Mp, Kp


def pallas_matmul(a, b, bias=None, relu=False, out_dtype=jnp.float32, n_out=None):
    """(M, K) @ (Kp, Np) on the MXU with fused bias (1, Np) + ReLU epilogue.

    `b` (and `bias`) must already be padded / bf16 (done once in
    prepare_params); only the activation `a` is padded here (M -> mult of 16).
    """
    M, K = a.shape
    Kp_b, Np = b.shape
    if n_out is None:
        n_out = Np
    tm, tn, tk, Mp, Kp = _pick_tiles(M, Np, K)
    assert Kp == Kp_b, f"weight K-pad mismatch: expected {Kp}, got {Kp_b}"

    a = a.astype(jnp.bfloat16)
    if (Mp, Kp) != (M, K):
        a = jnp.pad(a, ((0, Mp - M), (0, Kp - K)))

    has_bias = bias is not None
    operands = [a, b]
    in_specs = [
        pl.BlockSpec((tm, tk), lambda i, j, k: (i, k)),
        pl.BlockSpec((tk, tn), lambda i, j, k: (k, j)),
    ]
    if has_bias:
        assert bias.shape == (1, Np)
        operands.append(bias)
        in_specs.append(pl.BlockSpec((1, tn), lambda i, j, k: (0, j)))

    out_bytes = jnp.dtype(out_dtype).itemsize
    cost = pl.CostEstimate(
        flops=2 * Mp * Np * Kp,
        transcendentals=0,
        bytes_accessed=(Mp * Kp * 2 + Kp * Np * 2 + Mp * Np * out_bytes
                        + (Np * 4 if has_bias else 0)),
    )

    out = pl.pallas_call(
        _make_matmul_kernel(relu, has_bias),
        out_shape=jax.ShapeDtypeStruct((Mp, Np), out_dtype),
        grid_spec=pltpu.PrefetchScalarGridSpec(
            num_scalar_prefetch=0,
            grid=(Mp // tm, Np // tn, Kp // tk),
            in_specs=in_specs,
            out_specs=pl.BlockSpec((tm, tn), lambda i, j, k: (i, j)),
            scratch_shapes=[pltpu.VMEM((tm, tn), jnp.float32)],
        ),
        compiler_params=pltpu.CompilerParams(
            dimension_semantics=("parallel", "parallel", "arbitrary"),
        ),
        cost_estimate=cost,
    )(*operands)

    if Mp != M or n_out != Np:
        out = out[:M, :n_out]
    return out


# ----------------------------------------------------------------------------
# Conv / ConvTranspose glue (fused patch extraction + Pallas GEMM)
# ----------------------------------------------------------------------------
_DN = ("NHWC", "HWIO", "NHWC")


def _patches_nhwc(x, k, stride, pad):
    """im2col on an NHWC tensor as one fused XLA op.
    Output: (B, Ho, Wo, C*k*k) with features ordered (C, kh, kw), matching
    the PyTorch weight.reshape(Cout, Cin*k*k) ordering."""
    return lax.conv_general_dilated_patches(
        x, (k, k), (stride, stride), [(pad, pad), (pad, pad)],
        dimension_numbers=_DN)


def conv2d_nhwc(x, w_gemm, relu=True):
    """Conv2d(k=4, s=2, p=1, bias=False) as patches + Pallas GEMM (+ReLU)."""
    B = x.shape[0]
    p = _patches_nhwc(x, 4, 2, 1)
    _, Ho, Wo, K = p.shape
    out = pallas_matmul(p.reshape(B * Ho * Wo, K), w_gemm,
                        relu=relu, out_dtype=jnp.bfloat16)
    return out.reshape(B, Ho, Wo, w_gemm.shape[1])


def conv_transpose2d_subpixel_nhwc(x, w_gemm, relu=True):
    """ConvTranspose2d(k=4, s=2, p=1, bias=False) as ONE GEMM over 2x2
    patches of the pad-1 input.  Weight columns are (s_y, s_x)-major (see
    _subpixel_weight), so the 4-phase reassembly is a single
    reshape + transpose + slice."""
    B, H, W, _ = x.shape
    Cout = w_gemm.shape[1] // 4
    p = _patches_nhwc(x, 2, 1, 1)                           # (B, H+1, W+1, Cin*4)
    K = p.shape[-1]
    out = pallas_matmul(p.reshape(B * (H + 1) * (W + 1), K), w_gemm,
                        relu=relu, out_dtype=jnp.bfloat16)
    out = out.reshape(B, H + 1, W + 1, 2, 2, Cout)          # (.., s_y, s_x, C)
    out = out.transpose(0, 1, 3, 2, 4, 5)                   # (B, H+1, 2, W+1, 2, C)
    out = out.reshape(B, 2 * H + 2, 2 * W + 2, Cout)
    return out[:, 1:2 * H + 1, 1:2 * W + 1, :]


# ----------------------------------------------------------------------------
# Parameters: PyTorch-layout init + one-time GEMM-ready preparation
# ----------------------------------------------------------------------------
def init_params(key, z_dim=32, nc=3):
    """Parameters in the PyTorch nn.Module layout (kaiming-style init)."""
    keys = jax.random.split(key, 12)

    def kaiming(k, shape, fan_in):
        return jax.random.normal(k, shape, jnp.float32) * jnp.sqrt(2.0 / fan_in)

    p = {}
    p["enc_w1"] = kaiming(keys[0], (128, nc, 4, 4), nc * 16)
    p["enc_w2"] = kaiming(keys[1], (256, 128, 4, 4), 128 * 16)
    p["enc_w3"] = kaiming(keys[2], (512, 256, 4, 4), 256 * 16)
    p["enc_w4"] = kaiming(keys[3], (1024, 512, 4, 4), 512 * 16)
    p["fc_mu_w"] = kaiming(keys[4], (z_dim, 1024 * 2 * 2), 1024 * 2 * 2)
    p["fc_mu_b"] = jnp.zeros((z_dim,), jnp.float32)
    p["fc_lv_w"] = kaiming(keys[5], (z_dim, 1024 * 2 * 2), 1024 * 2 * 2)
    p["fc_lv_b"] = jnp.zeros((z_dim,), jnp.float32)
    p["dec_fc_w"] = kaiming(keys[6], (1024 * 4 * 4, z_dim), z_dim)
    p["dec_fc_b"] = jnp.zeros((1024 * 4 * 4,), jnp.float32)
    # ConvTranspose2d weights, PyTorch layout (Cin, Cout, kH, kW)
    p["dec_w1"] = kaiming(keys[7], (1024, 512, 4, 4), 1024 * 16)
    p["dec_w2"] = kaiming(keys[8], (512, 256, 4, 4), 512 * 16)
    p["dec_w3"] = kaiming(keys[9], (256, 128, 4, 4), 256 * 16)
    p["dec_w4"] = kaiming(keys[10], (128, nc, 1, 1), 128)
    p["dec_b4"] = jnp.zeros((nc,), jnp.float32)
    return p


def _conv_weight_to_gemm(w):
    # (Cout, Cin, kh, kw) -> (Cin*kh*kw, Cout); K ordered (Cin, kh, kw)
    Cout = w.shape[0]
    return w.reshape(Cout, -1).T


def _fc_weight_chw_to_hwc(w, C, H, W):
    # (out, C*H*W) with K ordered (C,H,W) -> K ordered (H,W,C) (NHWC inputs)
    out = w.shape[0]
    return w.reshape(out, C, H, W).transpose(0, 2, 3, 1).reshape(out, C * H * W)


def _subpixel_weight(w_t):
    """PyTorch ConvTranspose2d weight (Cin, Cout, 4, 4) -> (Cin*4, 4*Cout).

    Column block s = 2*s_y + s_x holds output phase (ry, rx) = (1-s_y, 1-s_x);
    phase (ry, rx) computed at 2x2-patch position (q, p) lands on output pixel
    (2q - ry, 2p - rx).  With this ordering the GEMM output reshaped to
    (.., H+1, W+1, 2, 2, Cout), interleaved over (q, s_y) / (p, s_x) and
    sliced [1:2H+1, 1:2W+1] is exactly the layer output."""
    Cin, Cout = w_t.shape[0], w_t.shape[1]
    cols = []
    for sy in range(2):
        for sx in range(2):
            ry, rx = 1 - sy, 1 - sx
            sub = w_t[:, :, 3 - ry::-2, 3 - rx::-2]          # (Cin, Cout, 2, 2)
            cols.append(sub.transpose(0, 2, 3, 1).reshape(Cin * 4, Cout))
    return jnp.concatenate(cols, axis=1)


def _pad_weight(w):
    """One-time K/N padding + bf16 cast of a (K, N) GEMM weight."""
    K, N = w.shape
    Kp, Np = _padded_kn(K, N)
    if (Kp, Np) != (K, N):
        w = jnp.pad(w, ((0, Kp - K), (0, Np - N)))
    return w.astype(jnp.bfloat16)


def _pad_bias(b, Np):
    b = b.astype(jnp.float32).reshape(1, -1)
    if b.shape[1] != Np:
        b = jnp.pad(b, ((0, 0), (0, Np - b.shape[1])))
    return b


def prepare_params(p, z_dim=32, nc=3):
    """One-time conversion of PyTorch-layout weights into padded bf16 GEMM form."""
    g = {}
    for i in (1, 2, 3, 4):
        g[f"enc_w{i}"] = _pad_weight(_conv_weight_to_gemm(p[f"enc_w{i}"]))
    # fused mu/logvar head (encoder output is NHWC -> reorder K to (H,W,C))
    w_mu = _fc_weight_chw_to_hwc(p["fc_mu_w"], 1024, 2, 2)
    w_lv = _fc_weight_chw_to_hwc(p["fc_lv_w"], 1024, 2, 2)
    g["heads_w"] = _pad_weight(jnp.concatenate([w_mu, w_lv], axis=0).T)
    g["heads_b"] = _pad_bias(jnp.concatenate([p["fc_mu_b"], p["fc_lv_b"]]),
                             g["heads_w"].shape[1])
    # decoder fc: emit (B, 4, 4, 1024) NHWC directly
    w_fc = p["dec_fc_w"].reshape(1024, 4, 4, z_dim).transpose(1, 2, 0, 3)
    g["dec_fc_w"] = _pad_weight(w_fc.reshape(1024 * 4 * 4, z_dim).T)
    g["dec_fc_b"] = _pad_bias(
        p["dec_fc_b"].reshape(1024, 4, 4).transpose(1, 2, 0).reshape(-1),
        g["dec_fc_w"].shape[1])
    for i in (1, 2, 3):
        g[f"dec_w{i}"] = _pad_weight(_subpixel_weight(p[f"dec_w{i}"]))
    # final ConvTranspose2d(128, nc, 1): a 1x1 conv == plain GEMM
    g["dec_w4"] = _pad_weight(p["dec_w4"].reshape(128, nc))
    g["dec_b4"] = _pad_bias(p["dec_b4"], g["dec_w4"].shape[1])
    return g


# ----------------------------------------------------------------------------
# Forward pass
# ----------------------------------------------------------------------------
def vae_forward(params, x, eps):
    """x: (B, nc, 32, 32) NCHW f32; eps: (B, z_dim).  Returns
    (x_recon, z, mu, logvar), matching VAE_forCIFAR.forward (Dropout2d eval)."""
    B = x.shape[0]
    nc = x.shape[1]
    z_dim = eps.shape[1]

    h = x.transpose(0, 2, 3, 1).astype(jnp.bfloat16)        # NCHW -> NHWC
    # encoder: (Conv2d 4x4/2 no-bias -> Dropout2d(identity) -> ReLU) x4
    h = conv2d_nhwc(h, params["enc_w1"])                    # (B, 16, 16, 128)
    h = conv2d_nhwc(h, params["enc_w2"])                    # (B,  8,  8, 256)
    h = conv2d_nhwc(h, params["enc_w3"])                    # (B,  4,  4, 512)
    h = conv2d_nhwc(h, params["enc_w4"])                    # (B,  2,  2, 1024)
    h = h.reshape(B, 2 * 2 * 1024)

    # fused fc_mu / fc_logvar (single GEMM, logical N = 2*z_dim)
    heads = pallas_matmul(h, params["heads_w"], bias=params["heads_b"],
                          n_out=2 * z_dim)
    mu, logvar = heads[:, :z_dim], heads[:, z_dim:]

    # reparameterize: tiny elementwise op, plain jnp
    z = mu + eps * jnp.exp(0.5 * logvar)

    # decoder
    d = pallas_matmul(z, params["dec_fc_w"], bias=params["dec_fc_b"],
                      out_dtype=jnp.bfloat16)
    d = d.reshape(B, 4, 4, 1024)
    d = conv_transpose2d_subpixel_nhwc(d, params["dec_w1"])    # (B,  8,  8, 512)
    d = conv_transpose2d_subpixel_nhwc(d, params["dec_w2"])    # (B, 16, 16, 256)
    d = conv_transpose2d_subpixel_nhwc(d, params["dec_w3"])    # (B, 32, 32, 128)
    r = pallas_matmul(d.reshape(B * 32 * 32, 128), params["dec_w4"],
                      bias=params["dec_b4"], relu=False,
                      out_dtype=jnp.bfloat16, n_out=nc)         # 1x1 conv-transpose
    x_recon = r.reshape(B, 32, 32, nc).transpose(0, 3, 1, 2).astype(jnp.float32)
    return x_recon, z, mu, logvar


if __name__ == "__main__":
    key = jax.random.PRNGKey(0)
    k_param, k_x, k_eps, k_chk = jax.random.split(key, 4)

    z_dim, nc, batch = 32, 3, 2
    raw_params = init_params(k_param, z_dim=z_dim, nc=nc)
    params = prepare_params(raw_params, z_dim=z_dim, nc=nc)   # one-time weight prep

    # CIFAR-shaped input: the encoder's View((-1, 1024*2*2)) forces 32x32 spatial.
    x = jax.random.normal(k_x, (batch, nc, 32, 32), jnp.float32)
    eps = jax.random.normal(k_eps, (batch, z_dim), jnp.float32)  # torch.randn analogue

    # --- correctness check: encoder Conv2d layer 1 vs f32 XLA conv -----------
    y_pl = jax.jit(conv2d_nhwc)(x.transpose(0, 2, 3, 1).astype(jnp.bfloat16),
                                params["enc_w1"])
    y_ref = jnp.maximum(lax.conv_general_dilated(
        x, raw_params["enc_w1"], (2, 2), [(1, 1), (1, 1)],
        dimension_numbers=("NCHW", "OIHW", "NCHW")), 0.0)
    y_pl = y_pl.transpose(0, 3, 1, 2).astype(jnp.float32)
    rel = jnp.linalg.norm(y_pl - y_ref) / jnp.linalg.norm(y_ref)
    assert float(rel) < 2e-2, f"conv2d check failed: rel={float(rel):.4e}"

    # --- correctness check: subpixel ConvTranspose2d (dec layer 1) -----------
    d_in = jax.random.normal(k_chk, (batch, 4, 4, 1024), jnp.float32)
    y_pl = jax.jit(conv_transpose2d_subpixel_nhwc)(
        d_in.astype(jnp.bfloat16), params["dec_w1"])
    w_t = raw_params["dec_w1"]                                 # (Cin, Cout, 4, 4)
    w_conv = jnp.flip(jnp.transpose(w_t, (1, 0, 2, 3)), axis=(2, 3))
    y_ref = lax.conv_general_dilated(
        jnp.transpose(d_in, (0, 3, 1, 2)), w_conv, (1, 1), [(2, 2), (2, 2)],
        lhs_dilation=(2, 2), dimension_numbers=("NCHW", "OIHW", "NCHW"))
    y_ref = jnp.maximum(jnp.transpose(y_ref, (0, 2, 3, 1)), 0.0)
    rel = (jnp.linalg.norm(y_pl.astype(jnp.float32) - y_ref)
           / jnp.linalg.norm(y_ref))
    assert float(rel) < 2e-2, f"conv-transpose check failed: rel={float(rel):.4e}"

    # --- full forward ---------------------------------------------------------
    fwd = jax.jit(vae_forward)
    x_recon, z, mu, logvar = fwd(params, x, eps)
    jax.block_until_ready((x_recon, z, mu, logvar))

    assert x_recon.shape == (batch, nc, 32, 32)
    assert z.shape == (batch, z_dim)
    assert mu.shape == (batch, z_dim)
    assert logvar.shape == (batch, z_dim)
    assert bool(jnp.all(jnp.isfinite(x_recon)))
    print("KERNEL_OK")
</pallas_src>

<mosaic_0001>
module attributes {stable_mosaic.version = 11 : i64} {
  func.func @kernel(%arg0: i32, %arg1: i32, %arg2: i32, %arg3: memref<512x48xbf16, #tpu.memory_space<vmem>>, %arg4: memref<48x128xbf16, #tpu.memory_space<vmem>>, %arg5: memref<512x128xbf16, #tpu.memory_space<vmem>>, %arg6: memref<512x128xf32, #tpu.memory_space<vmem>>) attributes {dimension_semantics = [#tpu.dimension_semantics<parallel>, #tpu.dimension_semantics<parallel>, #tpu.dimension_semantics<arbitrary>], iteration_bounds = array<i64: 1, 1, 1>, scalar_prefetch = 0 : i64, scratch_operands = 1 : i64, tpu.core_type = #tpu.core_type<tc>, window_params = [{transform_indices = @transform_0, window_bounds = array<i64: 512, 48>}, {transform_indices = @transform_1, window_bounds = array<i64: 48, 128>}, {transform_indices = @transform_2, window_bounds = array<i64: 512, 128>}]} {
    %c0_i32 = arith.constant 0 : i32
    %0 = arith.cmpi eq, %arg2, %c0_i32 : i32
    %1 = arith.extui %0 : i1 to i32
    %c0_i32_0 = arith.constant 0 : i32
    %2 = arith.cmpi ne, %1, %c0_i32_0 : i32
    scf.if %2 {
      %cst_10 = arith.constant 0.000000e+00 : f32
      %12 = vector.broadcast %cst_10 : f32 to vector<512x128xf32>
      %c0_11 = arith.constant 0 : index
      %c0_12 = arith.constant 0 : index
      %13 = vector.load %arg6[%c0_11, %c0_12] : memref<512x128xf32, #tpu.memory_space<vmem>>, vector<512x128xf32>
      tpu.vector_store %arg6[%c0_11, %c0_12], %12 {strides = array<i32>} : memref<512x128xf32, #tpu.memory_space<vmem>>, vector<512x128xf32>,
    } else {
    }
    %c0 = arith.constant 0 : index
    %c0_1 = arith.constant 0 : index
    %3 = vector.load %arg6[%c0, %c0_1] : memref<512x128xf32, #tpu.memory_space<vmem>>, vector<512x128xf32>
    %c0_2 = arith.constant 0 : index
    %c0_3 = arith.constant 0 : index
    %4 = vector.load %arg3[%c0_2, %c0_3] : memref<512x48xbf16, #tpu.memory_space<vmem>>, vector<512x48xbf16>
    %c0_4 = arith.constant 0 : index
    %c0_5 = arith.constant 0 : index
    %5 = vector.load %arg4[%c0_4, %c0_5] : memref<48x128xbf16, #tpu.memory_space<vmem>>, vector<48x128xbf16>
    %cst = arith.constant dense<0.000000e+00> : vector<512x128xf32>
    %6 = tpu.matmul %4, %5, %cst {dimension_numbers = #tpu.dot_dimension_numbers<[1], [0], [0], [1], [0, 0, 1, 1], [], []>} : vector<512x48xbf16>, vector<48x128xbf16>, vector<512x128xf32> -> vector<512x128xf32>
    %7 = arith.addf %3, %6 : vector<512x128xf32>
    %c0_6 = arith.constant 0 : index
    %c0_7 = arith.constant 0 : index
    %8 = vector.load %arg6[%c0_6, %c0_7] : memref<512x128xf32, #tpu.memory_space<vmem>>, vector<512x128xf32>
    tpu.vector_store %arg6[%c0_6, %c0_7], %7 {strides = array<i32>} : memref<512x128xf32, #tpu.memory_space<vmem>>, vector<512x128xf32>,
    %c0_i32_8 = arith.constant 0 : i32
    %9 = arith.cmpi eq, %arg2, %c0_i32_8 : i32
    %10 = arith.extui %9 : i1 to i32
    %c0_i32_9 = arith.constant 0 : i32
    %11 = arith.cmpi ne, %10, %c0_i32_9 : i32
    scf.if %11 {
      %c0_10 = arith.constant 0 : index
      %c0_11 = arith.constant 0 : index
      %12 = vector.load %arg6[%c0_10, %c0_11] : memref<512x128xf32, #tpu.memory_space<vmem>>, vector<512x128xf32>
      %cst_12 = arith.constant 0.000000e+00 : f32
      %13 = vector.broadcast %cst_12 : f32 to vector<512x128xf32>
      %14 = arith.maximumf %12, %13 : vector<512x128xf32>
      %15 = arith.truncf %14 : vector<512x128xf32> to vector<512x128xbf16>
      %c0_13 = arith.constant 0 : index
      %c0_14 = arith.constant 0 : index
      %16 = vector.load %arg5[%c0_13, %c0_14] : memref<512x128xbf16, #tpu.memory_space<vmem>>, vector<512x128xbf16>
      tpu.vector_store %arg5[%c0_13, %c0_14], %15 {strides = array<i32>} : memref<512x128xbf16, #tpu.memory_space<vmem>>, vector<512x128xbf16>,
    } else {
    }
    return
  }
  func.func @transform_0(%arg0: i32, %arg1: i32, %arg2: i32) -> (i32, i32) {
    %c0_i32 = arith.constant 0 : i32
    return %arg0, %arg2 : i32, i32
  }
  func.func @transform_1(%arg0: i32, %arg1: i32, %arg2: i32) -> (i32, i32) {
    %c0_i32 = arith.constant 0 : i32
    return %arg2, %arg1 : i32, i32
  }
  func.func @transform_2(%arg0: i32, %arg1: i32, %arg2: i32) -> (i32, i32) {
    %c0_i32 = arith.constant 0 : i32
    return %arg0, %arg1 : i32, i32
  }
}

</mosaic_0001>

<bundles_post_ra>
// kernel: conv2d_nhwc.1
= control target key start
LH: loop header
LB: loop body
LE: loop exit
PB: predicated region body
PF: predicated region fallthrough
CT: control target
= control target key end

     0   :  { %s1658_s0 = inlined_call_operand.vmem [shape: bf16[512,48], index: 0, kind: input, shape index: {}]   ;;  %s1659_s1 = inlined_call_operand.vmem [shape: bf16[48,128], index: 1, kind: input, shape index: {}]   ;;  %s1660_s2 = inlined_call_operand.hbm [shape: bf16[512,128], index: 2, kind: output, shape index: {}]  }
   0x1   :  { %v1270_v0 = vld [vmem:[%s1659_s1 + $0x10] sm:$0xff]  ;;  %v1269_v1 = vld [vmem:[%s1659_s1 + $0x8] sm:$0xff] }
   0x2   :  { %495 = vmatpush.bf16.msra.mxu0 %v1270_v0  ;;  %1462 = vmatpush.bf16.msra.mxu1 %v1270_v0 }
   0x3   :  { %1463 = vmatpush.bf16.msra.mxu2 %v1270_v0  ;;  %1464 = vmatpush.bf16.msra.mxu3 %v1270_v0 }
   0x4   :  { %7 = vsyncpa [#allocation4], 0  ;;  %v1268_v2 = vld [vmem:[%s1659_s1] sm:$0xff]  ;;  %vm393_vm0 = vcmask 392192   ;;  %v1237_v7 = vld [vmem:[%s1658_s0 + $0x8] sm:$0xff]  ;;  %s1052_s23 = sshll.u32 %s1660_s2, 4  ;;  %s1053_s23 = int_to_ptr.hbm [resolvable:$true] %s1052_s23 }
   0x5   :  { %v1236_v3 = vld [vmem:[%s1658_s0] sm:$0xff]  ;;  %v1245_v8 = vld [vmem:[%s1658_s0 + $0x48] sm:$0xff]  ;;  %v1238_v11 = vld [vmem:[%s1658_s0 + $0x10] sm:$0xff]  ;;  %s1501_s24 = smov 64   ;;  %s1502_s25 = smov 4  }
   0x6   :  { %496 = vmatpush.bf16.msra.mxu0 %v1269_v1  ;;  %1465 = vmatpush.bf16.msra.mxu1 %v1269_v1  ;;  %v1244_v4 = vld [vmem:[%s1658_s0 + $0x40] sm:$0xff]  ;;  %v1253_v9 = vld [vmem:[%s1658_s0 + $0x88] sm:$0xff]  ;;  %v1246_v12 = vld [vmem:[%s1658_s0 + $0x50] sm:$0xff] }
   0x7   :  { %1466 = vmatpush.bf16.msra.mxu2 %v1269_v1  ;;  %1467 = vmatpush.bf16.msra.mxu3 %v1269_v1  ;;  %v1252_v5 = vld [vmem:[%s1658_s0 + $0x80] sm:$0xff]  ;;  %v1261_v10 = vld [vmem:[%s1658_s0 + $0xc8] sm:$0xff]  ;;  %v1254_v13 = vld [vmem:[%s1658_s0 + $0x90] sm:$0xff] }
   0x8   :  { %v1260_v6 = vld [vmem:[%s1658_s0 + $0xc0] sm:$0xff]  ;;  %v1262_v14 = vld [vmem:[%s1658_s0 + $0xd0] sm:$0xff]  ;;  %v1239_v15 = vld [vmem:[%s1658_s0 + $0x18] sm:$0xff] }
   0x9   :  { %v1247_v16 = vld [vmem:[%s1658_s0 + $0x58] sm:$0xff]  ;;  %v1240_v19 = vld [vmem:[%s1658_s0 + $0x20] sm:$0xff]  ;;  %v1241_v23 = vld [vmem:[%s1658_s0 + $0x28] sm:$0xff] }
   0xa   :  { %497 = vmatpush.bf16.msra.mxu0 %v1268_v2  ;;  %1468 = vmatpush.bf16.msra.mxu1 %v1268_v2  ;;  %v1255_v17 = vld [vmem:[%s1658_s0 + $0x98] sm:$0xff]  ;;  %v1248_v20 = vld [vmem:[%s1658_s0 + $0x60] sm:$0xff]  ;;  %v1249_v24 = vld [vmem:[%s1658_s0 + $0x68] sm:$0xff] }
   0xb   :  { %1469 = vmatpush.bf16.msra.mxu2 %v1268_v2  ;;  %1470 = vmatpush.bf16.msra.mxu3 %v1268_v2  ;;  %v1263_v18 = vld [vmem:[%s1658_s0 + $0xd8] sm:$0xff]  ;;  %v1256_v21 = vld [vmem:[%s1658_s0 + $0xa0] sm:$0xff]  ;;  %v1257_v25 = vld [vmem:[%s1658_s0 + $0xa8] sm:$0xff] }
   0xc   :  { %v1264_v22 = vld [vmem:[%s1658_s0 + $0xe0] sm:$0xff]  ;;  %v1265_v26 = vld [vmem:[%s1658_s0 + $0xe8] sm:$0xff]  ;;  %v1242_v27 = vld [vmem:[%s1658_s0 + $0x30] sm:$0xff] }
   0xd   :  { %1204 = vmatmul.msk.bf16.vlgmr.msra.gmra.mxu0 %vm393_vm0, %v1236_v3  ;;  %1212 = vmatmul.msk.bf16.vlgmr.msra.gmra.mxu1 %vm393_vm0, %v1244_v4  ;;  %v1250_v28 = vld [vmem:[%s1658_s0 + $0x70] sm:$0xff]  ;;  %v1243_v31 = vld [vmem:[%s1658_s0 + $0x38] sm:$0xff] }
   0xe   :  { %1220 = vmatmul.msk.bf16.vlgmr.msra.gmra.mxu2 %vm393_vm0, %v1252_v5  ;;  %1228 = vmatmul.msk.bf16.vlgmr.msra.gmra.mxu3 %vm393_vm0, %v1260_v6  ;;  %v1258_v29 = vld [vmem:[%s1658_s0 + $0xb0] sm:$0xff]  ;;  %v1251_v32 = vld [vmem:[%s1658_s0 + $0x78] sm:$0xff] }
   0xf   :  { %v1266_v30 = vld [vmem:[%s1658_s0 + $0xf0] sm:$0xff]  ;;  %v1259_v33 = vld [vmem:[%s1658_s0 + $0xb8] sm:$0xff] }
  0x10   :  { %v1267_v34 = vld [vmem:[%s1658_s0 + $0xf8] sm:$0xff]  ;;  %s1500_s0 = smov [#allocation3]  }
  0x11   :  { %s1050_s21 = sshll.u32 %s1500_s0, 4  ;;  %s1051_s21 = int_to_ptr.vmem [resolvable:$true] %s1050_s21 }
  0x1d   :  { %1205 = vmatmul.msk.bf16.gmra.mxu0 %vm393_vm0, %v1237_v7  ;;  %1213 = vmatmul.msk.bf16.gmra.mxu1 %vm393_vm0, %v1245_v8 }
  0x1e   :  { %1221 = vmatmul.msk.bf16.gmra.mxu2 %vm393_vm0, %v1253_v9  ;;  %1229 = vmatmul.msk.bf16.gmra.mxu3 %vm393_vm0, %v1261_v10 }
  0x2d   :  { %1206 = vmatmul.msk.bf16.gmra.mxu0 %vm393_vm0, %v1238_v11  ;;  %1214 = vmatmul.msk.bf16.gmra.mxu1 %vm393_vm0, %v1246_v12 }
  0x2e   :  { %1222 = vmatmul.msk.bf16.gmra.mxu2 %vm393_vm0, %v1254_v13  ;;  %1230 = vmatmul.msk.bf16.gmra.mxu3 %vm393_vm0, %v1262_v14 }
  0x3d   :  { %1207 = vmatmul.msk.bf16.gmra.mxu0 %vm393_vm0, %v1239_v15  ;;  %1215 = vmatmul.msk.bf16.gmra.mxu1 %vm393_vm0, %v1247_v16 }
  0x3e   :  { %1223 = vmatmul.msk.bf16.gmra.mxu2 %vm393_vm0, %v1255_v17  ;;  %1231 = vmatmul.msk.bf16.gmra.mxu3 %vm393_vm0, %v1263_v18 }
  0x4d   :  { %1208 = vmatmul.msk.bf16.gmra.mxu0 %vm393_vm0, %v1240_v19  ;;  %1216 = vmatmul.msk.bf16.gmra.mxu1 %vm393_vm0, %v1248_v20 }
  0x4e   :  { %1224 = vmatmul.msk.bf16.gmra.mxu2 %vm393_vm0, %v1256_v21  ;;  %1232 = vmatmul.msk.bf16.gmra.mxu3 %vm393_vm0, %v1264_v22 }
  0x5d   :  { %1209 = vmatmul.msk.bf16.gmra.mxu0 %vm393_vm0, %v1241_v23  ;;  %1217 = vmatmul.msk.bf16.gmra.mxu1 %vm393_vm0, %v1249_v24 }
  0x5e   :  { %1225 = vmatmul.msk.bf16.gmra.mxu2 %vm393_vm0, %v1257_v25  ;;  %1233 = vmatmul.msk.bf16.gmra.mxu3 %vm393_vm0, %v1265_v26 }
  0x6d   :  { %1210 = vmatmul.msk.bf16.gmra.mxu0 %vm393_vm0, %v1242_v27  ;;  %1218 = vmatmul.msk.bf16.gmra.mxu1 %vm393_vm0, %v1250_v28 }
  0x6e   :  { %1226 = vmatmul.msk.bf16.gmra.mxu2 %vm393_vm0, %v1258_v29  ;;  %1234 = vmatmul.msk.bf16.gmra.mxu3 %vm393_vm0, %v1266_v30 }
  0x7d   :  { %1211 = vmatmul.msk.bf16.gmra.mxu0 %vm393_vm0, %v1243_v31  ;;  %1219 = vmatmul.msk.bf16.gmra.mxu1 %vm393_vm0, %v1251_v32 }
  0x7e   :  { %1227 = vmatmul.msk.bf16.gmra.mxu2 %vm393_vm0, %v1259_v33  ;;  %1235 = vmatmul.msk.bf16.gmra.mxu3 %vm393_vm0, %v1267_v34 }
  0x8a   :  { %v499_v35 = vpop.f32.mrf.mxu0  ;;  %v539_v36 = vpop.f32.mrf.mxu1 }
  0x8b   :  { %v854_v41 = vmax.f32 %v499_v35, 0.0  ;;  %v870_v42 = vmax.f32 %v539_v36, 0.0 }
  0x91   :  { %v579_v37 = vpop.f32.mrf.mxu2  ;;  %v619_v38 = vpop.f32.mrf.mxu3 }
  0x92   :  { %v501_v39 = vpop.f32.mrf.mxu0  ;;  %v541_v40 = vpop.f32.mrf.mxu1  ;;  %v886_v49 = vmax.f32 %v579_v37, 0.0  ;;  %v902_v50 = vmax.f32 %v619_v38, 0.0 }
  0x93   :  { %v855_v43 = vmax.f32 %v501_v39, 0.0  ;;  %v871_v44 = vmax.f32 %v541_v40, 0.0 }
  0x95   :  { %v1274_v45 = vpack.c.bf16 %v855_v43, %v854_v41  ;;  %v1314_v46 = vpack.c.bf16 %v871_v44, %v870_v42 }
  0x97   :  { %1275 = vst [vmem:[#allocation3] sm:$0xff] %v1274_v45  }
  0x98   :  { %1438 = vst [vmem:[#allocation3 + $0x40] sm:$0xff] %v1314_v46  }
  0x99   :  { %v581_v47 = vpop.f32.mrf.mxu2  ;;  %v621_v48 = vpop.f32.mrf.mxu3 }
  0x9a   :  { %v887_v51 = vmax.f32 %v581_v47, 0.0  ;;  %v903_v52 = vmax.f32 %v621_v48, 0.0  ;;  %v504_v53 = vpop.f32.mrf.mxu0  ;;  %v544_v54 = vpop.f32.mrf.mxu1 }
  0x9b   :  { %v856_v61 = vmax.f32 %v504_v53, 0.0  ;;  %v872_v62 = vmax.f32 %v544_v54, 0.0 }
  0x9c   :  { %v1354_v55 = vpack.c.bf16 %v887_v51, %v886_v49  ;;  %v1394_v56 = vpack.c.bf16 %v903_v52, %v902_v50 }
  0x9e   :  { %1446 = vst [vmem:[#allocation3 + $0x80] sm:$0xff] %v1354_v55  }
  0x9f   :  { %1454 = vst [vmem:[#allocation3 + $0xc0] sm:$0xff] %v1394_v56  }
  0xa1   :  { %v584_v57 = vpop.f32.mrf.mxu2  ;;  %v624_v58 = vpop.f32.mrf.mxu3 }
  0xa2   :  { %v506_v59 = vpop.f32.mrf.mxu0  ;;  %v546_v60 = vpop.f32.mrf.mxu1  ;;  %v888_v5 = vmax.f32 %v584_v57, 0.0  ;;  %v904_v6 = vmax.f32 %v624_v58, 0.0 }
  0xa3   :  { %v857_v63 = vmax.f32 %v506_v59, 0.0  ;;  %v873_v0 = vmax.f32 %v546_v60, 0.0 }
  0xa5   :  { %v1279_v1 = vpack.c.bf16 %v857_v63, %v856_v61  ;;  %v1319_v2 = vpack.c.bf16 %v873_v0, %v872_v62 }
  0xa7   :  { %1431 = vst [vmem:[#allocation3 + $0x8] sm:$0xff] %v1279_v1  }
  0xa8   :  { %1439 = vst [vmem:[#allocation3 + $0x48] sm:$0xff] %v1319_v2  }
  0xa9   :  { %v586_v3 = vpop.f32.mrf.mxu2  ;;  %v626_v4 = vpop.f32.mrf.mxu3 }
  0xaa   :  { %v889_v7 = vmax.f32 %v586_v3, 0.0  ;;  %v905_v8 = vmax.f32 %v626_v4, 0.0  ;;  %v509_v9 = vpop.f32.mrf.mxu0  ;;  %v549_v10 = vpop.f32.mrf.mxu1 }
  0xab   :  { %v858_v17 = vmax.f32 %v509_v9, 0.0  ;;  %v874_v18 = vmax.f32 %v549_v10, 0.0 }
  0xac   :  { %v1359_v11 = vpack.c.bf16 %v889_v7, %v888_v5  ;;  %v1399_v12 = vpack.c.bf16 %v905_v8, %v904_v6 }
  0xae   :  { %1447 = vst [vmem:[#allocation3 + $0x88] sm:$0xff] %v1359_v11  }
  0xaf   :  { %1455 = vst [vmem:[#allocation3 + $0xc8] sm:$0xff] %v1399_v12  }
  0xb1   :  { %v589_v13 = vpop.f32.mrf.mxu2  ;;  %v629_v14 = vpop.f32.mrf.mxu3 }
  0xb2   :  { %v511_v15 = vpop.f32.mrf.mxu0  ;;  %v551_v16 = vpop.f32.mrf.mxu1  ;;  %v890_v25 = vmax.f32 %v589_v13, 0.0  ;;  %v906_v26 = vmax.f32 %v629_v14, 0.0 }
  0xb3   :  { %v859_v19 = vmax.f32 %v511_v15, 0.0  ;;  %v875_v20 = vmax.f32 %v551_v16, 0.0 }
  0xb5   :  { %v1284_v21 = vpack.c.bf16 %v859_v19, %v858_v17  ;;  %v1324_v22 = vpack.c.bf16 %v875_v20, %v874_v18 }
  0xb7   :  { %1432 = vst [vmem:[#allocation3 + $0x10] sm:$0xff] %v1284_v21  }
  0xb8   :  { %1440 = vst [vmem:[#allocation3 + $0x50] sm:$0xff] %v1324_v22  }
  0xb9   :  { %v591_v23 = vpop.f32.mrf.mxu2  ;;  %v631_v24 = vpop.f32.mrf.mxu3 }
  0xba   :  { %v891_v27 = vmax.f32 %v591_v23, 0.0  ;;  %v907_v28 = vmax.f32 %v631_v24, 0.0  ;;  %v514_v29 = vpop.f32.mrf.mxu0  ;;  %v554_v30 = vpop.f32.mrf.mxu1 }
  0xbb   :  { %v860_v37 = vmax.f32 %v514_v29, 0.0  ;;  %v876_v38 = vmax.f32 %v554_v30, 0.0 }
  0xbc   :  { %v1364_v31 = vpack.c.bf16 %v891_v27, %v890_v25  ;;  %v1404_v32 = vpack.c.bf16 %v907_v28, %v906_v26 }
  0xbe   :  { %1448 = vst [vmem:[#allocation3 + $0x90] sm:$0xff] %v1364_v31  }
  0xbf   :  { %1456 = vst [vmem:[#allocation3 + $0xd0] sm:$0xff] %v1404_v32  }
  0xc1   :  { %v594_v33 = vpop.f32.mrf.mxu2  ;;  %v634_v34 = vpop.f32.mrf.mxu3 }
  0xc2   :  { %v516_v35 = vpop.f32.mrf.mxu0  ;;  %v556_v36 = vpop.f32.mrf.mxu1  ;;  %v892_v45 = vmax.f32 %v594_v33, 0.0  ;;  %v908_v46 = vmax.f32 %v634_v34, 0.0 }
  0xc3   :  { %v861_v39 = vmax.f32 %v516_v35, 0.0  ;;  %v877_v40 = vmax.f32 %v556_v36, 0.0 }
  0xc5   :  { %v1289_v41 = vpack.c.bf16 %v861_v39, %v860_v37  ;;  %v1329_v42 = vpack.c.bf16 %v877_v40, %v876_v38 }
  0xc7   :  { %1433 = vst [vmem:[#allocation3 + $0x18] sm:$0xff] %v1289_v41  }
  0xc8   :  { %1441 = vst [vmem:[#allocation3 + $0x58] sm:$0xff] %v1329_v42  }
  0xc9   :  { %v596_v43 = vpop.f32.mrf.mxu2  ;;  %v636_v44 = vpop.f32.mrf.mxu3 }
  0xca   :  { %v893_v47 = vmax.f32 %v596_v43, 0.0  ;;  %v909_v48 = vmax.f32 %v636_v44, 0.0  ;;  %v519_v49 = vpop.f32.mrf.mxu0  ;;  %v559_v50 = vpop.f32.mrf.mxu1 }
  0xcb   :  { %v862_v57 = vmax.f32 %v519_v49, 0.0  ;;  %v878_v58 = vmax.f32 %v559_v50, 0.0 }
  0xcc   :  { %v1369_v51 = vpack.c.bf16 %v893_v47, %v892_v45  ;;  %v1409_v52 = vpack.c.bf16 %v909_v48, %v908_v46 }
  0xce   :  { %1449 = vst [vmem:[#allocation3 + $0x98] sm:$0xff] %v1369_v51  }
  0xcf   :  { %1457 = vst [vmem:[#allocation3 + $0xd8] sm:$0xff] %v1409_v52  }
  0xd1   :  { %v599_v53 = vpop.f32.mrf.mxu2  ;;  %v639_v54 = vpop.f32.mrf.mxu3 }
  0xd2   :  { %v521_v55 = vpop.f32.mrf.mxu0  ;;  %v561_v56 = vpop.f32.mrf.mxu1  ;;  %v894_v1 = vmax.f32 %v599_v53, 0.0  ;;  %v910_v2 = vmax.f32 %v639_v54, 0.0 }
  0xd3   :  { %v863_v59 = vmax.f32 %v521_v55, 0.0  ;;  %v879_v60 = vmax.f32 %v561_v56, 0.0 }
  0xd5   :  { %v1294_v61 = vpack.c.bf16 %v863_v59, %v862_v57  ;;  %v1334_v62 = vpack.c.bf16 %v879_v60, %v878_v58 }
  0xd7   :  { %1434 = vst [vmem:[#allocation3 + $0x20] sm:$0xff] %v1294_v61  }
  0xd8   :  { %1442 = vst [vmem:[#allocation3 + $0x60] sm:$0xff] %v1334_v62  }
  0xd9   :  { %v601_v63 = vpop.f32.mrf.mxu2  ;;  %v641_v0 = vpop.f32.mrf.mxu3 }
  0xda   :  { %v895_v3 = vmax.f32 %v601_v63, 0.0  ;;  %v911_v4 = vmax.f32 %v641_v0, 0.0  ;;  %v524_v5 = vpop.f32.mrf.mxu0  ;;  %v564_v6 = vpop.f32.mrf.mxu1 }
  0xdb   :  { %v864_v13 = vmax.f32 %v524_v5, 0.0  ;;  %v880_v14 = vmax.f32 %v564_v6, 0.0 }
  0xdc   :  { %v1374_v7 = vpack.c.bf16 %v895_v3, %v894_v1  ;;  %v1414_v8 = vpack.c.bf16 %v911_v4, %v910_v2 }
  0xde   :  { %1450 = vst [vmem:[#allocation3 + $0xa0] sm:$0xff] %v1374_v7  }
  0xdf   :  { %1458 = vst [vmem:[#allocation3 + $0xe0] sm:$0xff] %v1414_v8  }
  0xe1   :  { %v604_v9 = vpop.f32.mrf.mxu2  ;;  %v644_v10 = vpop.f32.mrf.mxu3 }
  0xe2   :  { %v526_v11 = vpop.f32.mrf.mxu0  ;;  %v566_v12 = vpop.f32.mrf.mxu1  ;;  %v896_v21 = vmax.f32 %v604_v9, 0.0  ;;  %v912_v22 = vmax.f32 %v644_v10, 0.0 }
  0xe3   :  { %v865_v15 = vmax.f32 %v526_v11, 0.0  ;;  %v881_v16 = vmax.f32 %v566_v12, 0.0 }
  0xe5   :  { %v1299_v17 = vpack.c.bf16 %v865_v15, %v864_v13  ;;  %v1339_v18 = vpack.c.bf16 %v881_v16, %v880_v14 }
  0xe7   :  { %1435 = vst [vmem:[#allocation3 + $0x28] sm:$0xff] %v1299_v17  }
  0xe8   :  { %1443 = vst [vmem:[#allocation3 + $0x68] sm:$0xff] %v1339_v18  }
  0xe9   :  { %v606_v19 = vpop.f32.mrf.mxu2  ;;  %v646_v20 = vpop.f32.mrf.mxu3 }
  0xea   :  { %v897_v23 = vmax.f32 %v606_v19, 0.0  ;;  %v913_v24 = vmax.f32 %v646_v20, 0.0  ;;  %v529_v25 = vpop.f32.mrf.mxu0  ;;  %v569_v26 = vpop.f32.mrf.mxu1 }
  0xeb   :  { %v866_v33 = vmax.f32 %v529_v25, 0.0  ;;  %v882_v34 = vmax.f32 %v569_v26, 0.0 }
  0xec   :  { %v1379_v27 = vpack.c.bf16 %v897_v23, %v896_v21  ;;  %v1419_v28 = vpack.c.bf16 %v913_v24, %v912_v22 }
  0xee   :  { %1451 = vst [vmem:[#allocation3 + $0xa8] sm:$0xff] %v1379_v27  }
  0xef   :  { %1459 = vst [vmem:[#allocation3 + $0xe8] sm:$0xff] %v1419_v28  }
  0xf1   :  { %v609_v29 = vpop.f32.mrf.mxu2  ;;  %v649_v30 = vpop.f32.mrf.mxu3 }
  0xf2   :  { %v531_v31 = vpop.f32.mrf.mxu0  ;;  %v571_v32 = vpop.f32.mrf.mxu1  ;;  %v898_v41 = vmax.f32 %v609_v29, 0.0  ;;  %v914_v42 = vmax.f32 %v649_v30, 0.0 }
  0xf3   :  { %v867_v35 = vmax.f32 %v531_v31, 0.0  ;;  %v883_v36 = vmax.f32 %v571_v32, 0.0 }
  0xf5   :  { %v1304_v37 = vpack.c.bf16 %v867_v35, %v866_v33  ;;  %v1344_v38 = vpack.c.bf16 %v883_v36, %v882_v34 }
  0xf7   :  { %1436 = vst [vmem:[#allocation3 + $0x30] sm:$0xff] %v1304_v37  }
  0xf8   :  { %1444 = vst [vmem:[#allocation3 + $0x70] sm:$0xff] %v1344_v38  }
  0xf9   :  { %v611_v39 = vpop.f32.mrf.mxu2  ;;  %v651_v40 = vpop.f32.mrf.mxu3 }
  0xfa   :  { %v899_v43 = vmax.f32 %v611_v39, 0.0  ;;  %v915_v44 = vmax.f32 %v651_v40, 0.0  ;;  %v534_v45 = vpop.f32.mrf.mxu0  ;;  %v574_v46 = vpop.f32.mrf.mxu1 }
  0xfb   :  { %v868_v53 = vmax.f32 %v534_v45, 0.0  ;;  %v884_v54 = vmax.f32 %v574_v46, 0.0 }
  0xfc   :  { %v1384_v47 = vpack.c.bf16 %v899_v43, %v898_v41  ;;  %v1424_v48 = vpack.c.bf16 %v915_v44, %v914_v42 }
  0xfe   :  { %1452 = vst [vmem:[#allocation3 + $0xb0] sm:$0xff] %v1384_v47  }
  0xff   :  { %1460 = vst [vmem:[#allocation3 + $0xf0] sm:$0xff] %v1424_v48  }
 0x101   :  { %v614_v49 = vpop.f32.mrf.mxu2  ;;  %v654_v50 = vpop.f32.mrf.mxu3 }
 0x102   :  { %v536_v51 = vpop.f32.mrf.mxu0  ;;  %v576_v52 = vpop.f32.mrf.mxu1  ;;  %v900_v61 = vmax.f32 %v614_v49, 0.0  ;;  %v916_v62 = vmax.f32 %v654_v50, 0.0 }
 0x103   :  { %v869_v55 = vmax.f32 %v536_v51, 0.0  ;;  %v885_v56 = vmax.f32 %v576_v52, 0.0 }
 0x105   :  { %v1309_v57 = vpack.c.bf16 %v869_v55, %v868_v53  ;;  %v1349_v58 = vpack.c.bf16 %v885_v56, %v884_v54 }
 0x107   :  { %1437 = vst [vmem:[#allocation3 + $0x38] sm:$0xff] %v1309_v57  }
 0x108   :  { %1445 = vst [vmem:[#allocation3 + $0x78] sm:$0xff] %v1349_v58  }
 0x109   :  { %v616_v59 = vpop.f32.mrf.mxu2  ;;  %v656_v60 = vpop.f32.mrf.mxu3 }
 0x10a   :  { %v901_v63 = vmax.f32 %v616_v59, 0.0  ;;  %v917_v0 = vmax.f32 %v656_v60, 0.0 }
 0x10c   :  { %v1389_v1 = vpack.c.bf16 %v901_v63, %v900_v61  ;;  %v1429_v2 = vpack.c.bf16 %v917_v0, %v916_v62 }
 0x10e   :  { %1453 = vst [vmem:[#allocation3 + $0xb8] sm:$0xff] %v1389_v1  }
 0x10f   :  { %1461 = vst [vmem:[#allocation3 + $0xf8] sm:$0xff] %v1429_v2  }
 0x110   :  { %1058 = dma.vmem_to_hbm [thread:$0]  %s1051_s21, 4096, %s1053_s23, [#allocation4], %s1501_s24, %s1501_s24, %s1502_s25  }
 0x111   :  { %1498 = dma.done.wait [#allocation4], 4096  }
 0x112   :  { %1499 = vsyncadd [#allocation4], 4294963200 }
 0x113   :  { %1063 = vsyncpa [#allocation4], 1 }

</bundles_post_ra>
